<compile_context>
chip_gen: v6e
topology: v6e:2x2x1
jax: 0.10.0
libtpu: 0.0.40
codegen_flags: <defaults>
</compile_context>

<pallas_src>
import jax
import jax.numpy as jnp
from jax.experimental import pallas as pl
from jax.experimental.pallas import tpu as pltpu


_MIN_BLOCK_BYTES = 2 << 20   # don't shrink output blocks below ~2 MiB just to add steps
_TARGET_STEPS = 6            # >= 2-3 grid steps per TensorCore on v7x (2 TCs)
_MAX_TILE_ROWS = 4096


def _vmem_budget_bytes():
    """Per-generation double-buffered block budget."""
    try:
        cap = pltpu.get_tpu_info().vmem_capacity_bytes
    except Exception:
        cap = 64 << 20  # conservative fallback (v7x per-TC VMEM)
    # v7x (64 MiB VMEM, ~3.2 TB/s HBM): cap//3 ~ 21 MiB -> ~10 MiB output blocks.
    # v5e/v6e (128 MiB VMEM, slower HBM): clamp at 24 MiB; ~4-12 MiB blocks already
    # sit at ~85% of their HBM store roofline, bigger only adds VMEM pressure.
    return min(cap // 3, 24 << 20)


def _choose_bd_tile(BD, S, F, budget_bytes):
    """Pick a row tile.  Returns (tile_rows, padded_BD).

    Prefers divisors of BD (multiples of 8, or BD itself) so the final
    wrapper-side slice is a no-op.  Padding BD (which turns `out[:BD]` into an
    extra full copy of the output) is only the last resort.
    """
    out_row_bytes = S * F * 4
    row_bytes = 2 * (out_row_bytes + F * 4)          # double-buffered out + in, f32
    cap = max(8, min(_MAX_TILE_ROWS, budget_bytes // row_bytes))

    min_rows = max(8, (_MIN_BLOCK_BYTES + out_row_bytes - 1) // out_row_bytes)
    min_rows = ((min_rows + 7) // 8) * 8

    # Divisors of BD satisfying the sublane constraint (multiple of 8, or full BD).
    divs = set()
    i = 1
    while i * i <= BD:
        if BD % i == 0:
            divs.add(i)
            divs.add(BD // i)
        i += 1
    cands = sorted(d for d in divs if d <= cap and (d % 8 == 0 or d == BD))

    if cands:
        # Prefer the largest tile that still yields >= _TARGET_STEPS grid steps
        # (megacore balance on v7x) while keeping blocks >= ~2 MiB; prefer an
        # even step count so the two TensorCores split evenly.
        good = [d for d in cands if BD // d >= _TARGET_STEPS and d >= min_rows]
        if good:
            even = [d for d in good if (BD // d) % 2 == 0]
            return (max(even) if even else max(good)), BD
        return max(cands), BD

    # Last resort: no usable divisor and BD doesn't fit as a single block -> pad.
    tile = max(8, (cap // 8) * 8)
    padded = ((BD + tile - 1) // tile) * tile
    return tile, padded


def fourier_mod_kernel(x_ref, basis_ref, o_ref):
    """o[r, s, f] = x[r, f] * basis[s, f]   (pure VPU broadcast-multiply + store).

    x_ref:     (BD_TILE, F)      input coefficient rows
    basis_ref: (S, F)            precomputed sin basis for the selected steps
    o_ref:     (BD_TILE, S, F)
    """
    o_ref[...] = x_ref[...][:, None, :] * basis_ref[...][None, :, :]


def fourier_modulator(X, steps, freq, phase, dt):
    """X: (B, D, F) f32; steps: (S,) int32; freq/phase: (1, F) f32 -> (B, D, S, F) f32."""
    B, D, F = X.shape
    S = int(steps.shape[0])
    BD = B * D

    # ---- wrapper-side glue (tiny) -------------------------------------------
    # Basis rows for exactly the selected steps: sin(2*pi*(dt*step)*freq + phase).
    t_vals = (2.0 * jnp.pi * dt) * steps.astype(jnp.float32).reshape(S, 1)    # (S, 1)
    basis = jnp.sin(t_vals * freq.astype(jnp.float32)
                    + phase.astype(jnp.float32))                              # (S, F)

    x2 = X.reshape(BD, F).astype(jnp.float32)

    BD_TILE, BD_pad = _choose_bd_tile(BD, S, F, _vmem_budget_bytes())
    if BD_pad != BD:
        # Last-resort path only (BD has no usable divisor and is too big for VMEM).
        x2 = jnp.pad(x2, ((0, BD_pad - BD), (0, 0)))

    grid = (BD_pad // BD_TILE,)

    # vmem_limit derived from the actual double-buffered footprint + 25% margin.
    out_block = BD_TILE * S * F * 4
    in_block = BD_TILE * F * 4
    basis_block = S * F * 4
    vmem_limit = max(int(2 * (out_block + in_block + basis_block) * 1.25) + (1 << 20),
                     16 << 20)

    out = pl.pallas_call(
        fourier_mod_kernel,
        out_shape=jax.ShapeDtypeStruct((BD_pad, S, F), jnp.float32),
        grid=grid,
        in_specs=[
            pl.BlockSpec((BD_TILE, F), lambda i: (i, 0)),
            pl.BlockSpec((S, F), lambda i: (0, 0)),
        ],
        out_specs=pl.BlockSpec((BD_TILE, S, F), lambda i: (i, 0, 0)),
        compiler_params=pltpu.CompilerParams(
            dimension_semantics=("parallel",),
            vmem_limit_bytes=vmem_limit,
        ),
        cost_estimate=pl.CostEstimate(
            flops=BD_pad * S * F,
            transcendentals=0,
            bytes_accessed=4 * (BD_pad * F + S * F + BD_pad * S * F),
        ),
    )(x2, basis)

    if BD_pad != BD:
        out = out[:BD]
    return out.reshape(B, D, S, F)


if __name__ == "__main__":
    # Module hyper-params (small, consistent with the PyTorch module).
    window_len = 16
    num_freqs = 128
    dt = 1.0

    B, D = 2, 4
    S = 8

    key = jax.random.PRNGKey(0)
    kx, kf, kp = jax.random.split(key, 3)

    # Deterministic parameters (default init 1/dt/4 ones & zero phases, perturbed
    # -> equivalent to passing freq_init / phase_init).
    freq = (1.0 / dt / 4.0) * jnp.ones((1, num_freqs), jnp.float32) \
        + 0.05 * jax.random.normal(kf, (1, num_freqs), jnp.float32)
    phase = 0.1 * jax.random.normal(kp, (1, num_freqs), jnp.float32)

    X = jax.random.normal(kx, (B, D, num_freqs), jnp.float32)
    steps = jnp.array([0, 3, 5, 7, 8, 10, 12, 15], dtype=jnp.int32)

    y = fourier_modulator(X, steps, freq, phase, dt)
    y = jax.block_until_ready(y)

    # Pure-JAX reference (mirrors the PyTorch forward exactly).
    t = dt * jnp.arange(window_len, dtype=jnp.float32).reshape(-1, 1)
    functions = jnp.sin(2.0 * jnp.pi * t * freq + phase)        # (W, F)
    ref = X[:, :, None, :] * functions[steps]                    # (B, D, S, F)

    assert y.shape == (B, D, S, num_freqs)
    assert jnp.allclose(y, ref, atol=1e-5, rtol=1e-5), "mismatch vs reference"
    print("KERNEL_OK")
</pallas_src>

<mosaic_0001>
module attributes {stable_mosaic.version = 11 : i64} {
  func.func @fourier_mod_kernel(%arg0: i32, %arg1: memref<8x128xf32, #tpu.memory_space<vmem>>, %arg2: memref<8x128xf32, #tpu.memory_space<vmem>>, %arg3: memref<8x8x128xf32, #tpu.memory_space<vmem>>) attributes {dimension_semantics = [#tpu.dimension_semantics<parallel>], iteration_bounds = array<i64: 1>, scalar_prefetch = 0 : i64, scratch_operands = 0 : i64, tpu.core_type = #tpu.core_type<tc>, window_params = [{transform_indices = @transform_0, window_bounds = array<i64: 8, 128>}, {pipeline_mode = #tpu.pipeline_mode<synchronous>, transform_indices = @transform_1, window_bounds = array<i64: 8, 128>}, {transform_indices = @transform_2, window_bounds = array<i64: 8, 8, 128>}]} {
    %c0 = arith.constant 0 : index
    %c0_0 = arith.constant 0 : index
    %0 = vector.load %arg1[%c0, %c0_0] : memref<8x128xf32, #tpu.memory_space<vmem>>, vector<8x128xf32>
    %1 = vector.shape_cast %0 : vector<8x128xf32> to vector<8x1x128xf32>
    %c0_1 = arith.constant 0 : index
    %c0_2 = arith.constant 0 : index
    %2 = vector.load %arg2[%c0_1, %c0_2] : memref<8x128xf32, #tpu.memory_space<vmem>>, vector<8x128xf32>
    %3 = vector.shape_cast %2 : vector<8x128xf32> to vector<1x8x128xf32>
    %4 = vector.broadcast %1 : vector<8x1x128xf32> to vector<8x8x128xf32>
    %5 = vector.broadcast %3 : vector<1x8x128xf32> to vector<8x8x128xf32>
    %6 = arith.mulf %4, %5 : vector<8x8x128xf32>
    %c0_3 = arith.constant 0 : index
    %c0_4 = arith.constant 0 : index
    %c0_5 = arith.constant 0 : index
    %7 = vector.load %arg3[%c0_3, %c0_4, %c0_5] : memref<8x8x128xf32, #tpu.memory_space<vmem>>, vector<8x8x128xf32>
    tpu.vector_store %arg3[%c0_3, %c0_4, %c0_5], %6 {strides = array<i32>} : memref<8x8x128xf32, #tpu.memory_space<vmem>>, vector<8x8x128xf32>,
    return
  }
  func.func @transform_0(%arg0: i32) -> (i32, i32) {
    %c0_i32 = arith.constant 0 : i32
    %c0_i32_0 = arith.constant 0 : i32
    return %arg0, %c0_i32 : i32, i32
  }
  func.func @transform_1(%arg0: i32) -> (i32, i32) {
    %c0_i32 = arith.constant 0 : i32
    %c0_i32_0 = arith.constant 0 : i32
    %c0_i32_1 = arith.constant 0 : i32
    return %c0_i32, %c0_i32_0 : i32, i32
  }
  func.func @transform_2(%arg0: i32) -> (i32, i32, i32) {
    %c0_i32 = arith.constant 0 : i32
    %c0_i32_0 = arith.constant 0 : i32
    %c0_i32_1 = arith.constant 0 : i32
    return %arg0, %c0_i32, %c0_i32_0 : i32, i32, i32
  }
}

</mosaic_0001>

<bundles_post_ra>
// kernel: tpu_custom_call.1
= control target key start
LH: loop header
LB: loop body
LE: loop exit
PB: predicated region body
PF: predicated region fallthrough
CT: control target
= control target key end

     0   :  { %7 = vsyncpa [#allocation3], 0  ;;  %s265_s0 = inlined_call_operand.hbm [shape: f32[8,128], index: 0, kind: input, shape index: {}]   ;;  %s266_s1 = inlined_call_operand.hbm [shape: f32[8,128], index: 1, kind: input, shape index: {}]   ;;  %s267_s2 = inlined_call_operand.hbm [shape: f32[8,8,128], index: 2, kind: output, shape index: {}]  }
   0x1   :  { %8 = vsyncpa [#allocation6], 0 }
   0x2   :  { %9 = vsyncpa [#allocation4], 0  ;;  %s235_s9 = smov [#allocation2]   ;;  %s236_s11 = smov [#allocation5]  }
   0x3   :  { %s16_s10 = sshll.u32 %s235_s9, 4  ;;  %s26_s12 = sshll.u32 %s236_s11, 4  ;;  %s17_s10 = int_to_ptr.vmem [resolvable:$true] %s16_s10  ;;  %s27_s12 = int_to_ptr.vmem [resolvable:$true] %s26_s12 }
   0x4   :  { %s177_s13 = scalar_lea.vmem %s17_s10, 128  ;;  %p182_p1 = scmp.lt.s32.totalorder %s17_s10, %s17_s10 }
   0x5   :  { %p178_p0 = scmp.ne.s32.totalorder %s17_s10, %s177_s13  ;;  %p183_p2 = scmp.lt.s32.totalorder %s177_s13, %s177_s13 }
   0x7   :  { %p184_p3 = por %p183_p2, %p182_p1 }
   0x9   :  { %p185_p4 = pnand %p184_p3, %p178_p0 }
   0xb   :  { %188 = shalt.err (!%p185_p4)
}
   0xc   :  { %19 = dma.hbm_to_vmem [thread:$0]  %s265_s0, 128, %s17_s10, [#allocation3]  }
   0xd   :  { %s197_s16 = scalar_lea.vmem %s27_s12, 128  ;;  %p202_p6 = scmp.lt.s32.totalorder %s27_s12, %s27_s12 }
   0xe   :  { %p198_p5 = scmp.ne.s32.totalorder %s27_s12, %s197_s16  ;;  %p203_p7 = scmp.lt.s32.totalorder %s197_s16, %s197_s16 }
  0x10   :  { %p204_p8 = por %p203_p7, %p202_p6 }
  0x12   :  { %p205_p9 = pnand %p204_p8, %p198_p5 }
  0x14   :  { %208 = shalt.err (!%p205_p9)
}
  0x15   :  { %29 = dma.hbm_to_vmem [thread:$0]  %s266_s1, 128, %s27_s12, [#allocation6]  }
  0x16   :  { %229 = dma.done.wait [#allocation3], 128  }
  0x17   :  { %230 = vsyncadd [#allocation3], 4294967168 }
  0x18   :  { %231 = dma.done.wait [#allocation6], 128  }
  0x19   :  { %232 = vsyncadd [#allocation6], 4294967168  ;;  %v42_v0 = vlaneseq  ;;  %v237_v1 = vmov 1966171168   ;;  %v36_v6 = vld [vmem:[#allocation2] sm:$0xff]  ;;  %v87_v13 = vld [vmem:[#allocation5] sm:$0xff] }
  0x1a   :  { %v40_v2 = vunpack.c.l.s4 %v237_v1  ;;  %v38_v9 = vcombine.high %v36_v6, %v36_v6  ;;  %s238_s0 = smov [#allocation7]  }
  0x1b   :  { %v43_v3 = vshrl.u32 %v42_v0, 7  ;;  %s149_s1 = sshll.u32 %s238_s0, 4  ;;  %s150_s1 = int_to_ptr.vmem [resolvable:$true] %s149_s1 }
  0x1c   :  { %v41_v4 = vunpack.c.0.s8 %v40_v2  ;;  %s209_s19 = scalar_lea.vmem %s150_s1, 1024  ;;  %p214_p11 = scmp.lt.s32.totalorder %s150_s1, %s150_s1 }
  0x1d   :  { %v90_v8 = vsub.s32 0, %v43_v3  ;;  %p210_p10 = scmp.ne.s32.totalorder %s150_s1, %s209_s19  ;;  %p215_p12 = scmp.lt.s32.totalorder %s209_s19, %s209_s19 }
  0x1e   :  { %v44_v5 = vsub.s32 %v41_v4, %v43_v3 }
  0x1f   :  { %p216_p13 = por %p215_p12, %p214_p11 }
  0x20   :  { %v45_v7 = vrot.slane %v36_v6, %v44_v5  ;;  %v52_v12 = vrot.slane %v38_v9, %v44_v5 }
  0x21   :  { %p217_p0 = pnand %p216_p13, %p210_p10 }
  0x22   :  { %v61_v10 = vrot.slane %v45_v7, %v44_v5  ;;  %v53_v11 = vcombine.high %v45_v7, %v45_v7  ;;  %v68_v17 = vrot.slane %v52_v12, %v44_v5  ;;  %v54_v18 = vcombine.high %v52_v12, %v52_v12 }
  0x24   :  { %v91_v14 = vrot.slane %v61_v10, %v90_v8  ;;  %v75_v15 = vrot.slane %v53_v11, %v44_v5  ;;  %v83_v16 = vcombine.high %v61_v10, %v61_v10  ;;  %v107_v23 = vrot.slane %v68_v17, %v90_v8 }
  0x25   :  { %v82_v24 = vrot.slane %v54_v18, %v44_v5  ;;  %v84_v25 = vcombine.high %v68_v17, %v68_v17 }
  0x26   :  { %v128_v19 = vmul.f32 %v91_v14, %v87_v13  ;;  %v95_v20 = vrot.slane %v75_v15, %v90_v8  ;;  %v99_v21 = vrot.slane %v83_v16, %v90_v8  ;;  %v85_v22 = vcombine.high %v75_v15, %v75_v15 }
  0x27   :  { %v132_v29 = vmul.f32 %v107_v23, %v87_v13  ;;  %v111_v30 = vrot.slane %v82_v24, %v90_v8  ;;  %v115_v31 = vrot.slane %v84_v25, %v90_v8  ;;  %v86_v32 = vcombine.high %v82_v24, %v82_v24 }
  0x28   :  { %136 = vst [vmem:[#allocation7] sm:$0xff] %v128_v19  ;;  %v129_v26 = vmul.f32 %v95_v20, %v87_v13  ;;  %v130_v27 = vmul.f32 %v99_v21, %v87_v13  ;;  %v103_v28 = vrot.slane %v85_v22, %v90_v8 }
  0x29   :  { %140 = vst [vmem:[#allocation7 + $0x20] sm:$0xff] %v132_v29  ;;  %v133_v34 = vmul.f32 %v111_v30, %v87_v13  ;;  %v134_v35 = vmul.f32 %v115_v31, %v87_v13  ;;  %v119_v36 = vrot.slane %v86_v32, %v90_v8 }
  0x2a   :  { %137 = vst [vmem:[#allocation7 + $0x8] sm:$0xff] %v129_v26  ;;  %138 = vst [vmem:[#allocation7 + $0x10] sm:$0xff] %v130_v27  ;;  %v131_v33 = vmul.f32 %v103_v28, %v87_v13 }
  0x2b   :  { %141 = vst [vmem:[#allocation7 + $0x28] sm:$0xff] %v133_v34  ;;  %142 = vst [vmem:[#allocation7 + $0x30] sm:$0xff] %v134_v35  ;;  %v135_v37 = vmul.f32 %v119_v36, %v87_v13 }
  0x2c   :  { %139 = vst [vmem:[#allocation7 + $0x18] sm:$0xff] %v131_v33 }
  0x2d   :  { %143 = vst [vmem:[#allocation7 + $0x38] sm:$0xff] %v135_v37 }
  0x2e   :  { %220 = shalt.err (!%p217_p0)
}
  0x2f   :  { %s239_s20 = smov 128   ;;  %s240_s21 = smov 8  }
  0x30   :  { %155 = dma.vmem_to_hbm [thread:$0]  %s150_s1, 1024, %s267_s2, [#allocation4], %s239_s20, %s239_s20, %s240_s21  }
  0x31   :  { %233 = dma.done.wait [#allocation4], 1024  }
  0x32   :  { %234 = vsyncadd [#allocation4], 4294966272 }
  0x33   :  { %159 = vsyncpa [#allocation3], 1 }
  0x34   :  { %160 = vsyncpa [#allocation6], 1 }
  0x35   :  { %161 = vsyncpa [#allocation4], 1 }

</bundles_post_ra>
